<compile_context>
chip_gen: v5e
topology: v5e:2x2
jax: 0.10.0
libtpu: 0.0.40
codegen_flags: <defaults>
</compile_context>

<pallas_src>
import functools

import jax
import jax.numpy as jnp
from jax.experimental import pallas as pl
from jax.experimental.pallas import tpu as pltpu


PIXEL_MEAN = jnp.array([123.675, 116.28, 103.53], dtype=jnp.float32)
PIXEL_STD = jnp.array([58.395, 57.12, 57.375], dtype=jnp.float32)
STRIDE = 4            # backbone output stride (== sem-seg head common stride)
FEAT_DIM = 128        # backbone feature channels (lane-dense)
NUM_CLASSES = 8       # sem-seg classes
HEAD_PAD = 128        # classifier padded to a full lane width (unmasked stores)

# Tile targets (all kernels are memory-bound -> big tiles amortize the
# ~0.35 us per-grid-step pipeline overhead; all fit well under the VMEM cap).
DENSE_TM = 4096       # backbone matmul rows per step
NECK_TM = 2048        # neck + head rows per step
PIX_TP = 16384        # full-resolution pixels (lanes) per step for flow / occ


# --------------------------------------------------------------------------
# Tiling / compiler-param helpers
# --------------------------------------------------------------------------
@functools.lru_cache(maxsize=None)
def _vmem_limit_bytes():
    """Generation-aware scoped-VMEM cap: ~half of physical VMEM, 32..96 MiB
    (32 MiB on v7x's 64 MiB VMEM, 64 MiB on v5e/v6e's 128 MiB)."""
    cap = 64 * 1024 * 1024                      # conservative fallback (v7x)
    try:
        cap = int(pltpu.get_tpu_info().vmem_capacity_bytes)
    except Exception:
        pass
    return max(32 * 1024 * 1024, min(cap // 2, 96 * 1024 * 1024))


def _compiler_params(semantics):
    return pltpu.CompilerParams(dimension_semantics=semantics,
                                vmem_limit_bytes=_vmem_limit_bytes())


def _pick_tile(m, target, multiple, min_steps=1):
    """Largest tile <= target that divides m and is a multiple of `multiple`.
    When possible, also keeps at least `min_steps` grid steps (so a v7x grid
    never collapses to one step and idles a TensorCore). Falls back to the
    full extent, which is always a legal block."""
    if min_steps > 1 and m >= multiple * min_steps:
        target = min(target, m // min_steps)
    if m <= target:
        return m
    t = (target // multiple) * multiple
    while t >= multiple:
        if m % t == 0:
            return t
        t -= multiple
    return m


# --------------------------------------------------------------------------
# Pallas kernels
# --------------------------------------------------------------------------
def _flow_kernel(w_ref, img_ref, ref_ref, o_ref):
    # Tiny per-pixel linear flow head (FlowNet2 stand-in). The 14 coefficients
    # live in SMEM; everything else is VPU FMAs on lane-dense pixel tiles, so
    # the MXU never sees a K=3 matmul and no tiny weight blocks are fetched.
    img = img_ref[0]                                     # (3, TP) raw RGB f32
    ref = ref_ref[0]                                     # (3, TP)
    i0, i1, i2 = img[0:1], img[1:2], img[2:3]
    r0, r1, r2 = ref[0:1], ref[1:2], ref[2:3]
    fx = (w_ref[0] * i0 + w_ref[1] * i1 + w_ref[2] * i2
          + w_ref[3] * r0 + w_ref[4] * r1 + w_ref[5] * r2 + w_ref[12])
    fy = (w_ref[6] * i0 + w_ref[7] * i1 + w_ref[8] * i2
          + w_ref[9] * r0 + w_ref[10] * r1 + w_ref[11] * r2 + w_ref[13])
    o_ref[0] = jnp.concatenate([fx, fy], axis=0)         # (2, TP) lane-dense


def _occ_kernel(img_ref, warp_ref, o_ref):
    # occ = exp(-50 * (sum_c(img - warp))^2) on RAW 0..255 frames — matches the
    # torch reference, where denormalize() mutates img/ref_img in place before
    # the warp + occlusion computation (sum over C first, then square).
    d = img_ref[0] - warp_ref[0]                         # (3, TP)
    s = jnp.sum(d, axis=0, keepdims=True)                # (1, TP)
    o_ref[0] = jnp.exp(-50.0 * s * s)


def _matmul_bias_kernel(x_ref, w_ref, b_ref, o_ref, *, relu):
    # bf16 activations/weights, f32 MXU accumulation, bf16 writeback.
    acc = jnp.dot(x_ref[...], w_ref[...], preferred_element_type=jnp.float32)
    acc = acc + b_ref[...]
    if relu:
        acc = jnp.maximum(acc, 0.0)
    o_ref[...] = acc.astype(o_ref.dtype)


def _neck_head_kernel(main_ref, warp_ref, occ_ref, w_ref, b_ref, o_ref):
    # extra_neck fusion + 1x1-conv sem-seg classifier, fused so the fused
    # 128-ch feature map never round-trips through HBM. Elementwise math stays
    # f32 (v5e VPU has no bf16); only the MXU operand is bf16. Output is padded
    # to 128 classes so every store is an unmasked full-lane vst.
    fused = (main_ref[...].astype(jnp.float32)
             + occ_ref[...] * warp_ref[...].astype(jnp.float32))   # (TM, F)
    logits = jnp.dot(fused.astype(jnp.bfloat16), w_ref[...],
                     preferred_element_type=jnp.float32)           # (TM, 128)
    o_ref[...] = logits + b_ref[...]


# --------------------------------------------------------------------------
# pallas_call wrappers (tiled, lane-dense, parallel grids)
# --------------------------------------------------------------------------
def flow_head(flow_w, flow_b, img, ref_img):
    """flow (N, 2, H, W) from raw frames; FlowNet2's /255 input scaling is
    folded into the 14 SMEM coefficients."""
    N, C, H, W = img.shape
    P = H * W
    tp = _pick_tile(P, PIX_TP, 128)
    wi = jnp.transpose(flow_w[:C] / 255.0)               # (2, 3) img coeffs
    wr = jnp.transpose(flow_w[C:] / 255.0)               # (2, 3) ref coeffs
    w_flat = jnp.concatenate(
        [wi[0], wr[0], wi[1], wr[1], flow_b]).astype(jnp.float32)   # (14,)
    out = pl.pallas_call(
        _flow_kernel,
        out_shape=jax.ShapeDtypeStruct((N, 2, P), jnp.float32),
        grid=(N, P // tp),
        in_specs=[
            pl.BlockSpec(memory_space=pltpu.MemorySpace.SMEM),
            pl.BlockSpec((1, C, tp), lambda n, p: (n, 0, p)),
            pl.BlockSpec((1, C, tp), lambda n, p: (n, 0, p)),
        ],
        out_specs=pl.BlockSpec((1, 2, tp), lambda n, p: (n, 0, p)),
        compiler_params=_compiler_params(("parallel", "parallel")),
    )(w_flat, img.reshape(N, C, P), ref_img.reshape(N, C, P))
    return out.reshape(N, 2, H, W)


def occ_mask(img, warp_img):
    N, C, H, W = img.shape
    P = H * W
    tp = _pick_tile(P, PIX_TP, 128)
    out = pl.pallas_call(
        _occ_kernel,
        out_shape=jax.ShapeDtypeStruct((N, 1, P), jnp.float32),
        grid=(N, P // tp),
        in_specs=[pl.BlockSpec((1, C, tp), lambda n, p: (n, 0, p))] * 2,
        out_specs=pl.BlockSpec((1, 1, tp), lambda n, p: (n, 0, p)),
        compiler_params=_compiler_params(("parallel", "parallel")),
    )(img.reshape(N, C, P), warp_img.reshape(N, C, P))
    return out.reshape(N, 1, H, W)


def dense_tiled(x2d, w, b, relu=False, out_dtype=jnp.bfloat16):
    """(M, K) @ (K, F) + b, row-tiled over M; bf16 operands, f32 MXU
    accumulation, bf16 writeback (features are re-read downstream, so bf16
    halves the dominant HBM traffic)."""
    M, K = x2d.shape
    Fo = w.shape[1]
    tm = _pick_tile(M, DENSE_TM, 16, min_steps=2)
    kern = functools.partial(_matmul_bias_kernel, relu=relu)
    return pl.pallas_call(
        kern,
        out_shape=jax.ShapeDtypeStruct((M, Fo), out_dtype),
        grid=(M // tm,),
        in_specs=[
            pl.BlockSpec((tm, K), lambda i: (i, 0)),
            pl.BlockSpec((K, Fo), lambda i: (0, 0)),
            pl.BlockSpec((1, Fo), lambda i: (0, 0)),
        ],
        out_specs=pl.BlockSpec((tm, Fo), lambda i: (i, 0)),
        compiler_params=_compiler_params(("parallel",)),
    )(x2d.astype(jnp.bfloat16), w.astype(jnp.bfloat16),
      b.reshape(1, Fo).astype(jnp.float32))


def neck_head_logits(head_w, head_b, feat_main, feat_ref_warp, occ_col):
    """Fused extra_neck (main + occ * warped_ref) + 1x1-conv classifier.
    The classifier is zero-padded to HEAD_PAD (=128) output lanes so stores are
    unmasked full-lane vst; the real classes are sliced off afterwards."""
    M, Fc = feat_main.shape
    K = head_w.shape[1]
    w_pad = jnp.zeros((Fc, HEAD_PAD), jnp.float32).at[:, :K].set(head_w)
    b_pad = jnp.zeros((HEAD_PAD,), jnp.float32).at[:K].set(head_b)
    tm = _pick_tile(M, NECK_TM, 16, min_steps=2)
    out = pl.pallas_call(
        _neck_head_kernel,
        out_shape=jax.ShapeDtypeStruct((M, HEAD_PAD), jnp.float32),
        grid=(M // tm,),
        in_specs=[
            pl.BlockSpec((tm, Fc), lambda i: (i, 0)),
            pl.BlockSpec((tm, Fc), lambda i: (i, 0)),
            pl.BlockSpec((tm, 1), lambda i: (i, 0)),
            pl.BlockSpec((Fc, HEAD_PAD), lambda i: (0, 0)),
            pl.BlockSpec((1, HEAD_PAD), lambda i: (0, 0)),
        ],
        out_specs=pl.BlockSpec((tm, HEAD_PAD), lambda i: (i, 0)),
        compiler_params=_compiler_params(("parallel",)),
    )(feat_main, feat_ref_warp, occ_col,
      w_pad.astype(jnp.bfloat16), b_pad.reshape(1, HEAD_PAD))
    return out[:, :K]


# --------------------------------------------------------------------------
# Plain-JAX glue
# --------------------------------------------------------------------------
def bilinear_warp_nhwc(img, flow):
    """Resample2d: bilinear warp of img (N,H,W,C) by flow (N,H,W,2) = [dx, dy].
    TODO(synk): data-dependent gather kept in XLA; a manual-DMA Pallas gather
    (ideally fused with the neck/head kernel) would remove ~5 feature-map HBM
    passes. NHWC keeps the 4 corner gathers lane-contiguous."""
    N, H, W, C = img.shape
    gy, gx = jnp.meshgrid(jnp.arange(H, dtype=jnp.float32),
                          jnp.arange(W, dtype=jnp.float32), indexing="ij")
    sx = gx[None] + flow[..., 0]
    sy = gy[None] + flow[..., 1]
    x0 = jnp.floor(sx)
    y0 = jnp.floor(sy)
    wx1 = sx - x0
    wy1 = sy - y0
    wx0 = 1.0 - wx1
    wy0 = 1.0 - wy1
    x0c = jnp.clip(x0, 0, W - 1).astype(jnp.int32)
    x1c = jnp.clip(x0 + 1, 0, W - 1).astype(jnp.int32)
    y0c = jnp.clip(y0, 0, H - 1).astype(jnp.int32)
    y1c = jnp.clip(y0 + 1, 0, H - 1).astype(jnp.int32)
    n_idx = jnp.arange(N)[:, None, None]

    def g(yy, xx):
        return img[n_idx, yy, xx]                        # (N,H,W,C)

    return (g(y0c, x0c) * (wy0 * wx0)[..., None]
            + g(y0c, x1c) * (wy0 * wx1)[..., None]
            + g(y1c, x0c) * (wy1 * wx0)[..., None]
            + g(y1c, x1c) * (wy1 * wx1)[..., None])


def space_to_depth(x, s):
    """(N,C,H,W) -> (N*(H/s)*(W/s), C*s*s) patches (== sxs conv, stride s)."""
    N, C, H, W = x.shape
    x = x.reshape(N, C, H // s, s, W // s, s)
    x = jnp.transpose(x, (0, 2, 4, 1, 3, 5))
    return x.reshape(N * (H // s) * (W // s), C * s * s)


# --------------------------------------------------------------------------
# Model
# --------------------------------------------------------------------------
def init_params(key):
    k1, k2, k3 = jax.random.split(key, 3)
    c_in = 3
    return {
        # backbone: 4x4 stride-4 conv expressed as (C*16, FEAT_DIM) matmul
        "backbone_w": 0.05 * jax.random.normal(k1, (c_in * STRIDE * STRIDE, FEAT_DIM), jnp.float32),
        "backbone_b": jnp.zeros((FEAT_DIM,), jnp.float32),
        # TODO(synk): FlowNet2 pretrained optical-flow net replaced by a tiny
        # deterministic per-pixel flow head (no checkpoint loading possible).
        "flow_w": 0.01 * jax.random.normal(k2, (2 * c_in, 2), jnp.float32),
        "flow_b": jnp.zeros((2,), jnp.float32),
        # sem_seg_head: 1x1 conv classifier
        "head_w": 0.05 * jax.random.normal(k3, (FEAT_DIM, NUM_CLASSES), jnp.float32),
        "head_b": jnp.zeros((NUM_CLASSES,), jnp.float32),
    }


def fold_normalization(backbone_w, backbone_b):
    """Fold (x - mean)/std per-channel normalization into the backbone matmul."""
    std_col = jnp.repeat(PIXEL_STD, STRIDE * STRIDE)     # (C*16,)
    mean_col = jnp.repeat(PIXEL_MEAN, STRIDE * STRIDE)
    w_eff = backbone_w / std_col[:, None]
    b_eff = backbone_b - (mean_col / std_col) @ backbone_w
    return w_eff, b_eff


def backbone_pair(params, img, ref_img):
    """Backbone (4x4/stride-4 conv + ReLU) on BOTH frames in one tiled matmul.
    The patch slab is bf16 (XLA fuses the cast into the patch transpose), and
    the feature output is bf16."""
    N, C, H, W = img.shape
    w_eff, b_eff = fold_normalization(params["backbone_w"], params["backbone_b"])
    patches = jnp.concatenate(
        [space_to_depth(img.astype(jnp.bfloat16), STRIDE),
         space_to_depth(ref_img.astype(jnp.bfloat16), STRIDE)], axis=0)
    feats = dense_tiled(patches, w_eff, b_eff, relu=True)      # (2M, F) bf16
    M = N * (H // STRIDE) * (W // STRIDE)
    return feats[:M], feats[M:]


def compute_flow(params, img, ref_img, scale_factor):
    """Mirrors VideoSemanticSegmentor.compute_flow. The torch reference
    normalizes, then denormalizes the clones in place before FlowNet2 and the
    occlusion computation, so both the flow head and the occ mask consume the
    RAW 0..255 frames — that round trip is folded away here."""
    N, C, H, W = img.shape
    flow = flow_head(params["flow_w"], params["flow_b"], img, ref_img)  # (N,2,H,W)
    flow_nhwc = jnp.transpose(flow, (0, 2, 3, 1))                       # (N,H,W,2)
    warp = bilinear_warp_nhwc(jnp.transpose(ref_img, (0, 2, 3, 1)), flow_nhwc)
    warp = jnp.transpose(warp, (0, 3, 1, 2))                            # (N,3,H,W)
    occ = occ_mask(img, warp)                                           # (N,1,H,W)
    if scale_factor != 1:
        hq, wq = int(H * scale_factor), int(W * scale_factor)
        flow_q = jax.image.resize(flow_nhwc, (N, hq, wq, 2), "bilinear") * scale_factor
        occ_q = jax.image.resize(occ.reshape(N, H, W, 1), (N, hq, wq, 1), "bilinear")
    else:
        flow_q = flow_nhwc
        occ_q = occ.reshape(N, H, W, 1)
    return flow_q, occ_q   # NHWC, at the backbone feature resolution


def sem_seg_postprocess(result_hwk, out_h, out_w):
    # No ImageList padding here (all inputs same size), so the crop is identity.
    r = jax.image.resize(result_hwk, (out_h, out_w, result_hwk.shape[-1]), "bilinear")
    return jnp.transpose(r, (2, 0, 1))                   # (K, out_h, out_w)


def video_semantic_segmentor_forward(params, batched_inputs):
    """Inference-mode forward of VideoSemanticSegmentor."""
    images = jnp.stack([x["image"] for x in batched_inputs]).astype(jnp.float32)
    ref_images = jnp.stack([x["ref_image"] for x in batched_inputs]).astype(jnp.float32)
    N, C, H, W = images.shape
    Hq, Wq = H // STRIDE, W // STRIDE

    # flow + occlusion mask at quarter resolution (== backbone feature stride)
    flow_q, occ_q = compute_flow(params, images, ref_images, scale_factor=0.25)

    # backbone on main + ref frames (normalization folded into weights)
    feat_main, feat_ref = backbone_pair(params, images, ref_images)     # (M,F) bf16

    # extra_neck: warp reference features by quarter-res flow (NHWC gather), then
    # occlusion-gated fusion + 1x1-conv sem-seg head in ONE fused Pallas kernel.
    Fc = feat_main.shape[1]
    ref_warp = bilinear_warp_nhwc(feat_ref.reshape(N, Hq, Wq, Fc),
                                  flow_q).astype(jnp.bfloat16)
    logits = neck_head_logits(params["head_w"], params["head_b"],
                              feat_main,
                              ref_warp.reshape(N * Hq * Wq, Fc),
                              occ_q.reshape(N * Hq * Wq, 1))
    logits = logits.reshape(N, Hq, Wq, NUM_CLASSES)

    # x4 bilinear upsample back to input resolution
    logits = jax.image.resize(logits, (N, H, W, NUM_CLASSES), "bilinear")

    processed = []
    for i, inp in enumerate(batched_inputs):
        r = sem_seg_postprocess(logits[i], inp["height"], inp["width"])
        processed.append({"sem_seg": r})
    return processed


# --------------------------------------------------------------------------
if __name__ == "__main__":
    key = jax.random.PRNGKey(0)
    kp, ki, kr = jax.random.split(key, 3)
    params = init_params(kp)

    N, C, H, W = 2, 3, 16, 16
    imgs = jax.random.uniform(ki, (N, C, H, W), jnp.float32, 0.0, 255.0)
    refs = jax.random.uniform(kr, (N, C, H, W), jnp.float32, 0.0, 255.0)

    batched_inputs = [
        {"image": imgs[i], "ref_image": refs[i], "height": H, "width": W}
        for i in range(N)
    ]

    outputs = video_semantic_segmentor_forward(params, batched_inputs)
    for o in outputs:
        jax.block_until_ready(o["sem_seg"])
        assert o["sem_seg"].shape == (NUM_CLASSES, H, W)
    print("KERNEL_OK")
</pallas_src>

<mosaic_0001>
module attributes {stable_mosaic.version = 11 : i64} {
  func.func @_flow_kernel(%arg0: i32, %arg1: i32, %arg2: memref<14xf32, #tpu.memory_space<smem>>, %arg3: memref<1x3x256xf32, #tpu.memory_space<vmem>>, %arg4: memref<1x3x256xf32, #tpu.memory_space<vmem>>, %arg5: memref<1x2x256xf32, #tpu.memory_space<vmem>>) attributes {dimension_semantics = [#tpu.dimension_semantics<parallel>, #tpu.dimension_semantics<parallel>], iteration_bounds = array<i64: 2, 1>, scalar_prefetch = 0 : i64, scratch_operands = 0 : i64, tpu.core_type = #tpu.core_type<tc>, window_params = [{transform_indices = @transform_0, window_bounds = array<i64: 14>}, {transform_indices = @transform_1, window_bounds = array<i64: 1, 3, 256>}, {transform_indices = @transform_2, window_bounds = array<i64: 1, 3, 256>}, {transform_indices = @transform_3, window_bounds = array<i64: 1, 2, 256>}]} {
    %c0 = arith.constant 0 : index
    %c0_0 = arith.constant 0 : index
    %c0_1 = arith.constant 0 : index
    %0 = vector.load %arg3[%c0, %c0_0, %c0_1] : memref<1x3x256xf32, #tpu.memory_space<vmem>>, vector<1x3x256xf32>
    %1 = vector.shape_cast %0 : vector<1x3x256xf32> to vector<3x256xf32>
    %c0_2 = arith.constant 0 : index
    %c0_3 = arith.constant 0 : index
    %c0_4 = arith.constant 0 : index
    %2 = vector.load %arg4[%c0_2, %c0_3, %c0_4] : memref<1x3x256xf32, #tpu.memory_space<vmem>>, vector<1x3x256xf32>
    %3 = vector.shape_cast %2 : vector<1x3x256xf32> to vector<3x256xf32>
    %4 = vector.extract_strided_slice %1 {offsets = [0, 0], sizes = [1, 256], strides = [1, 1]} : vector<3x256xf32> to vector<1x256xf32>
    %5 = vector.extract_strided_slice %1 {offsets = [1, 0], sizes = [1, 256], strides = [1, 1]} : vector<3x256xf32> to vector<1x256xf32>
    %6 = vector.extract_strided_slice %1 {offsets = [2, 0], sizes = [1, 256], strides = [1, 1]} : vector<3x256xf32> to vector<1x256xf32>
    %7 = vector.extract_strided_slice %3 {offsets = [0, 0], sizes = [1, 256], strides = [1, 1]} : vector<3x256xf32> to vector<1x256xf32>
    %8 = vector.extract_strided_slice %3 {offsets = [1, 0], sizes = [1, 256], strides = [1, 1]} : vector<3x256xf32> to vector<1x256xf32>
    %9 = vector.extract_strided_slice %3 {offsets = [2, 0], sizes = [1, 256], strides = [1, 1]} : vector<3x256xf32> to vector<1x256xf32>
    %c0_5 = arith.constant 0 : index
    %10 = memref.load %arg2[%c0_5] : memref<14xf32, #tpu.memory_space<smem>>
    %11 = vector.broadcast %10 : f32 to vector<1x256xf32>
    %12 = arith.mulf %11, %4 : vector<1x256xf32>
    %c1 = arith.constant 1 : index
    %13 = memref.load %arg2[%c1] : memref<14xf32, #tpu.memory_space<smem>>
    %14 = vector.broadcast %13 : f32 to vector<1x256xf32>
    %15 = arith.mulf %14, %5 : vector<1x256xf32>
    %16 = arith.addf %12, %15 : vector<1x256xf32>
    %c2 = arith.constant 2 : index
    %17 = memref.load %arg2[%c2] : memref<14xf32, #tpu.memory_space<smem>>
    %18 = vector.broadcast %17 : f32 to vector<1x256xf32>
    %19 = arith.mulf %18, %6 : vector<1x256xf32>
    %20 = arith.addf %16, %19 : vector<1x256xf32>
    %c3 = arith.constant 3 : index
    %21 = memref.load %arg2[%c3] : memref<14xf32, #tpu.memory_space<smem>>
    %22 = vector.broadcast %21 : f32 to vector<1x256xf32>
    %23 = arith.mulf %22, %7 : vector<1x256xf32>
    %24 = arith.addf %20, %23 : vector<1x256xf32>
    %c4 = arith.constant 4 : index
    %25 = memref.load %arg2[%c4] : memref<14xf32, #tpu.memory_space<smem>>
    %26 = vector.broadcast %25 : f32 to vector<1x256xf32>
    %27 = arith.mulf %26, %8 : vector<1x256xf32>
    %28 = arith.addf %24, %27 : vector<1x256xf32>
    %c5 = arith.constant 5 : index
    %29 = memref.load %arg2[%c5] : memref<14xf32, #tpu.memory_space<smem>>
    %30 = vector.broadcast %29 : f32 to vector<1x256xf32>
    %31 = arith.mulf %30, %9 : vector<1x256xf32>
    %32 = arith.addf %28, %31 : vector<1x256xf32>
    %c12 = arith.constant 12 : index
    %33 = memref.load %arg2[%c12] : memref<14xf32, #tpu.memory_space<smem>>
    %34 = vector.broadcast %33 : f32 to vector<1x256xf32>
    %35 = arith.addf %32, %34 : vector<1x256xf32>
    %c6 = arith.constant 6 : index
    %36 = memref.load %arg2[%c6] : memref<14xf32, #tpu.memory_space<smem>>
    %37 = vector.broadcast %36 : f32 to vector<1x256xf32>
    %38 = arith.mulf %37, %4 : vector<1x256xf32>
    %c7 = arith.constant 7 : index
    %39 = memref.load %arg2[%c7] : memref<14xf32, #tpu.memory_space<smem>>
    %40 = vector.broadcast %39 : f32 to vector<1x256xf32>
    %41 = arith.mulf %40, %5 : vector<1x256xf32>
    %42 = arith.addf %38, %41 : vector<1x256xf32>
    %c8 = arith.constant 8 : index
    %43 = memref.load %arg2[%c8] : memref<14xf32, #tpu.memory_space<smem>>
    %44 = vector.broadcast %43 : f32 to vector<1x256xf32>
    %45 = arith.mulf %44, %6 : vector<1x256xf32>
    %46 = arith.addf %42, %45 : vector<1x256xf32>
    %c9 = arith.constant 9 : index
    %47 = memref.load %arg2[%c9] : memref<14xf32, #tpu.memory_space<smem>>
    %48 = vector.broadcast %47 : f32 to vector<1x256xf32>
    %49 = arith.mulf %48, %7 : vector<1x256xf32>
    %50 = arith.addf %46, %49 : vector<1x256xf32>
    %c10 = arith.constant 10 : index
    %51 = memref.load %arg2[%c10] : memref<14xf32, #tpu.memory_space<smem>>
    %52 = vector.broadcast %51 : f32 to vector<1x256xf32>
    %53 = arith.mulf %52, %8 : vector<1x256xf32>
    %54 = arith.addf %50, %53 : vector<1x256xf32>
    %c11 = arith.constant 11 : index
    %55 = memref.load %arg2[%c11] : memref<14xf32, #tpu.memory_space<smem>>
    %56 = vector.broadcast %55 : f32 to vector<1x256xf32>
    %57 = arith.mulf %56, %9 : vector<1x256xf32>
    %58 = arith.addf %54, %57 : vector<1x256xf32>
    %c13 = arith.constant 13 : index
    %59 = memref.load %arg2[%c13] : memref<14xf32, #tpu.memory_space<smem>>
    %60 = vector.broadcast %59 : f32 to vector<1x256xf32>
    %61 = arith.addf %58, %60 : vector<1x256xf32>
    %62 = tpu.concatenate %35, %61 in 0 : vector<1x256xf32>, vector<1x256xf32> -> vector<2x256xf32>
    %c0_6 = arith.constant 0 : index
    %c0_7 = arith.constant 0 : index
    %c0_8 = arith.constant 0 : index
    %63 = vector.load %arg5[%c0_6, %c0_7, %c0_8] : memref<1x2x256xf32, #tpu.memory_space<vmem>>, vector<1x2x256xf32>
    %64 = vector.shape_cast %63 : vector<1x2x256xf32> to vector<2x256xf32>
    %65 = vector.shape_cast %62 : vector<2x256xf32> to vector<1x2x256xf32>
    tpu.vector_store %arg5[%c0_6, %c0_7, %c0_8], %65 {strides = array<i32>} : memref<1x2x256xf32, #tpu.memory_space<vmem>>, vector<1x2x256xf32>,
    return
  }
  func.func @transform_0(%arg0: i32, %arg1: i32) -> i32 {
    %c0_i32 = arith.constant 0 : i32
    %c0_i32_0 = arith.constant 0 : i32
    return %c0_i32 : i32
  }
  func.func @transform_1(%arg0: i32, %arg1: i32) -> (i32, i32, i32) {
    %c0_i32 = arith.constant 0 : i32
    %c0_i32_0 = arith.constant 0 : i32
    return %arg0, %c0_i32, %arg1 : i32, i32, i32
  }
  func.func @transform_2(%arg0: i32, %arg1: i32) -> (i32, i32, i32) {
    %c0_i32 = arith.constant 0 : i32
    %c0_i32_0 = arith.constant 0 : i32
    return %arg0, %c0_i32, %arg1 : i32, i32, i32
  }
  func.func @transform_3(%arg0: i32, %arg1: i32) -> (i32, i32, i32) {
    %c0_i32 = arith.constant 0 : i32
    %c0_i32_0 = arith.constant 0 : i32
    return %arg0, %c0_i32, %arg1 : i32, i32, i32
  }
}

</mosaic_0001>

<bundles_post_ra>
// kernel: tpu_custom_call.1
= control target key start
LH: loop header
LB: loop body
LE: loop exit
PB: predicated region body
PF: predicated region fallthrough
CT: control target
= control target key end

     0   :  { %8 = vsyncpa [#allocation4], 0  ;;  %s811_s0 = inlined_call_operand.vmem [shape: f32[14], index: 0, kind: input, shape index: {}]   ;;  %s812_s1 = inlined_call_operand.vmem [shape: f32[2,3,256], index: 1, kind: input, shape index: {}]   ;;  %s813_s2 = inlined_call_operand.vmem [shape: f32[2,3,256], index: 2, kind: input, shape index: {}]   ;;  %s814_s3 = inlined_call_operand.hbm [shape: f32[2,2,256], index: 3, kind: output, shape index: {}]  }
   0x1   :  { %9 = vsyncpa [#allocation3], 0 }
   0x2   :  { %11 = vsyncpa [#allocation3 + $0x1], 0  ;;  %s708_s12 = smov 0   ;;  %s710_s13 = smov 0  }
   0x3   :  { %s712_s14 = smov 0   ;;  %s714_s15 = smov 0  }
   0x4   :  { %s716_s16 = smov 0   ;;  %s718_s17 = smov 0  }
   0x5 LB: > { %s481_s18 = sadd.s32 4294967295, %s685_s17   ;;  %s482_s19 = sadd.s32 4294967294, %s685_s17   ;;  %s685_s17 = sphi %s718_s17, %s17_s17   ;;  %s681_s16 = sphi %s716_s16, %s821_s16   ;;  %s677_s15 = sphi %s714_s15, %s820_s15   ;;  %s673_s14 = sphi %s712_s14, %s819_s14   ;;  %s669_s13 = sphi %s710_s13, %s818_s13   ;;  %s665_s12 = sphi %s708_s12, %s817_s12  }
   0x6   : > { %s29_s20 = sadd.s32 1, %s681_s16  ;;  %s115_s21 = sadd.s32 1, %s673_s14 }
   0x7   : > { %p31_p0 = scmp.ge.s32.totalorder %s29_s20, 2  ;;  %p125_p1 = scmp.ne.s32.totalorder %s673_s14, %s669_s13 }
   0x8   : > { %p126_p2 = scmp.eq.s32.totalorder %s481_s18, 1  ;;  %p131_p3 = scmp.ne.s32.totalorder %s669_s13, %s665_s12 }
   0x9   : > { %s823_s20 = smov (%p31_p0, %s29_s20), 0  ;;  %p132_p5 = scmp.eq.s32.totalorder %s482_s19, 1 }
   0xa   : > { %p748_p4 = por %p126_p2, %p125_p1  ;;  %s110_s23 = ssub.s32 %s681_s16, %s823_s20 }
   0xb   : > { %p483_p6 = scmp.ge.s32.totalorder %s685_s17, 1  ;;  %p113_p7 = scmp.eq.s32.totalorder %s110_s23, 0 }
   0xc   : > { %p755_p8 = por %p132_p5, %p131_p3  ;;  %p139_p9 = scmp.lt.s32.totalorder %s685_s17, 3 }
   0xd   : > { %s761_s25 = scalar_select %p113_p7, %s673_s14, %s115_s21  }
   0xe   : > { %p140_p10 = pnand %p483_p6, %p139_p9  ;;  %p536_p11 = scmp.eq.s32.totalorder %s481_s18, 0 }
   0xf   : > { %s151_s28 = sshll.u32 %s811_s0, 4  ;;  %s687_s29 = smov [#allocation2]   ;;  %s152_s28 = int_to_ptr.vmem [resolvable:$true] %s151_s28 }
  0x10   : > { %p528_p12 = pneg %p140_p10  ;;  %190 = sbr.rel (%p140_p10) target bundleno = 65 (0x41), region = 32 }
  0x12   : > { %p529_p13 = pnand %p536_p11, %p528_p12 }
  0x14   : > { %531 = dma.vmem_to_smem (!%p529_p13), %s152_s28, 16, %s687_s29, [#allocation4]  }
  0x15   : > { %656 = dma.done.wait (%p536_p11), [#allocation4], 16  }
  0x16   : > { %658 = vsyncadd (%p536_p11), [#allocation4], 4294967280 }
  0x17   : > { %197 = sfence }
  0x18   : > { %p230_p0 = scmp.lt.s32.totalorder %s677_s15, 1  ;;  %s252_s30 = sld [smem:[#allocation2]]  ;;  %vm346_vm0 = vcmask 1040384   ;;  %vm352_vm1 = vcmask 1041408  }
  0x19   : > { %s493_s4 = sld [smem:[#allocation2 + $0x1]]  ;;  %s521_s10 = sshll.u32 %s677_s15, 2 }
  0x1a   : > { %s231_s5 = scalar_select %p230_p0, %s677_s15, 1 }
  0x1b   : > { %s495_s6 = sld [smem:[#allocation2 + $0x2]]  ;;  %s370_s19 = scalar_lea.hbm %s814_s3, %s521_s10 }
  0x1c   : > { %s519_s7 = sshll.u32 %s231_s5, 3  ;;  %s497_s8 = sld [smem:[#allocation2 + $0x3]] }
  0x1d   : > { %s237_s11 = scalar_lea.vmem %s812_s1, %s519_s7  ;;  %s247_s21 = scalar_lea.vmem %s813_s2, %s519_s7 }
  0x1e   : > { %v250_v0 = vld [vmem:[%s237_s11] sm:$0x77]  ;;  %v253_v1 = vstv %s252_s30  ;;  %s498_s23 = sld [smem:[#allocation2 + $0x4]] }
  0x1f   : > { %v256_v2 = vstv %s493_s4  ;;  %s500_s26 = sld [smem:[#allocation2 + $0x5]]  ;;  %v254_v3 = vmul.f32 %v253_v1, %v250_v0  ;;  %v251_v5 = vld [vmem:[%s247_s21] sm:$0x77] }
  0x20   : > { %v257_v4 = vmul.f32 %v256_v2, %v250_v0  ;;  %s503_s27 = sld [smem:[#allocation2 + $0x6]] }
  0x21   : > { %v264_v6 = vstv %s495_s6  ;;  %s504_s28 = sld [smem:[#allocation2 + $0x7]] }
  0x22   : > { %v494_v7 = vrot.slane %v257_v4, 9  ;;  %v265_v8 = vmul.f32 %v264_v6, %v250_v0  ;;  %v272_v9 = vstv %s497_s8  ;;  %s506_s29 = sld [smem:[#allocation2 + $0x8]]  ;;  %s226_s8 = sand.u32 1, %s669_s13  }
  0x23   : > { %v273_v12 = vmul.f32 %v272_v9, %v251_v5  ;;  %s508_s5 = sld [smem:[#allocation2 + $0x9]]  ;;  %s488_s9 = sshll.u32 %s226_s8, 2 }
  0x24   : > { %v262_v10 = vadd.f32 %v494_v7, %v254_v3  ;;  %v496_v11 = vrot.slane %v265_v8, 10  ;;  %v276_v13 = vstv %s498_s23  ;;  %s509_s30 = sld [smem:[#allocation2 + $0xa]]  ;;  %s228_s21 = scalar_lea.vmem [#allocation5], %s488_s9 }
  0x25   : > { %v277_v14 = vmul.f32 %v276_v13, %v251_v5  ;;  %v284_v15 = vstv %s500_s26  ;;  %s511_s4 = sld [smem:[#allocation2 + $0xb]]  ;;  %s372_s23 = sshll.u32 %s228_s21, 4  ;;  %s373_s23 = int_to_ptr.vmem [resolvable:$true] %s372_s23 }
  0x26   : > { %v270_v16 = vadd.f32 %v496_v11, %v262_v10  ;;  %v285_v18 = vmul.f32 %v284_v15, %v251_v5  ;;  %v295_v19 = vstv %s503_s27  ;;  %s502_s6 = sld [smem:[#allocation2 + $0xc]]  ;;  %s374_s26 = sshll.u32 %s370_s19, 4  ;;  %s375_s26 = int_to_ptr.hbm [resolvable:$true] %s374_s26 }
  0x27   : > { %v499_v17 = vrot.slane %v277_v14, 9  ;;  %v298_v21 = vstv %s504_s28  ;;  %v296_v22 = vmul.f32 %v295_v19, %v250_v0  ;;  %s513_s7 = sld [smem:[#allocation2 + $0xd]]  ;;  %s357_s15 = scalar_lea.sflag [#allocation3], %s226_s8 }
  0x28   : > { %v274_v20 = vadd.f32 %v273_v12, %v270_v16  ;;  %v299_v23 = vmul.f32 %v298_v21, %v250_v0  ;;  %v306_v24 = vstv %s506_s29  ;;  %v501_v28 = vrot.slane %v285_v18, 10  ;;  %s617_s27 = sshra.s32 %s375_s26, 4  ;;  %s618_s27 = int_to_ptr.hbm [resolvable:$true] %s617_s27 }
  0x29   : > { %v307_v25 = vmul.f32 %v306_v24, %v250_v0  ;;  %v314_v26 = vstv %s508_s5  ;;  %s619_s28 = scalar_lea.hbm %s618_s27, 4  ;;  %p624_p5 = scmp.lt.s32.totalorder %s618_s27, %s814_s3 }
  0x2a   : > { %v282_v27 = vadd.f32 %v499_v17, %v274_v20  ;;  %v505_v29 = vrot.slane %v299_v23, 9  ;;  %v318_v30 = vstv %s509_s30  ;;  %v315_v35 = vmul.f32 %v314_v26, %v251_v5  ;;  %p620_p1 = scmp.ne.s32.totalorder %s618_s27, %s619_s28  ;;  %s623_s30 = scalar_lea.hbm %s814_s3, 8 }
  0x2b   : > { %v507_v31 = vrot.slane %v307_v25, 10  ;;  %v319_v32 = vmul.f32 %v318_v30, %v251_v5  ;;  %v326_v33 = vstv %s511_s4  ;;  %p625_p6 = scmp.lt.s32.totalorder %s623_s30, %s619_s28 }
  0x2c   : > { %v304_v34 = vadd.f32 %v505_v29, %v296_v22  ;;  %v327_v36 = vmul.f32 %v326_v33, %v251_v5  ;;  %v290_v37 = vadd.f32 %v501_v28, %v282_v27  ;;  %v292_v40 = vstv %s502_s6  ;;  %p621_p2 = pnand %p620_p1, %p748_p4 }
  0x2d   : > { %v510_v39 = vrot.slane %v319_v32, 9  ;;  %v334_v45 = vstv %s513_s7  ;;  %p626_p7 = por %p625_p6, %p624_p5 }
  0x2e   : > { %v312_v38 = vadd.f32 %v507_v31, %v304_v34  ;;  %v512_v42 = vrot.slane %v327_v36, 10  ;;  %v293_v43 = vadd.f32 %v292_v40, %v290_v37  ;;  %p622_p3 = pneg %p621_p2 }
  0x30   : > { %v316_v41 = vadd.f32 %v315_v35, %v312_v38  ;;  %v337_v48 = vperm.slane %v293_v43, 0  ;;  %v338_v49 = vperm.slane %v293_v43, 4  ;;  %p627_p9 = pnand %p626_p7, %p622_p3 }
  0x32   : > { %v324_v44 = vadd.f32 %v510_v39, %v316_v41 }
  0x34   : > { %v332_v46 = vadd.f32 %v512_v42, %v324_v44 }
  0x36   : > { %v335_v47 = vadd.f32 %v334_v45, %v332_v46 }
  0x38   : > { %v342_v50 = vperm.slane %v335_v47, 0  ;;  %v343_v51 = vperm.slane %v335_v47, 4 }
  0x3a   : > { %v347_v52 = vsel %vm346_vm0, %v337_v48, %v342_v50  ;;  %v348_v53 = vsel %vm346_vm0, %v338_v49, %v343_v51 }
  0x3b   : > { %v351_v54 = vrot.slane %v348_v53, 6 }
  0x3d   : > { %v353_v55 = vsel %vm352_vm1, %v347_v52, %v351_v54 }
  0x3e   : > { %355 = vst [vmem:[%s228_s21] sm:$0xf] %v353_v55 }
  0x3f   : > { %630 = shalt.err (!%p627_p9)
}
  0x40   : > { %526 = dma.vmem_to_hbm [thread:$0]  (%p748_p4), %s373_s23, 64, %s375_s26, %s357_s15  }
  0x41 PF: > { %p538_p10 = scmp.ge.s32.totalorder %s685_s17, 2  ;;  %s386_s7 = sand.u32 1, %s665_s12  }
  0x42   : > { %s387_s8 = scalar_lea.sflag [#allocation3], %s386_s7 }
  0x43   : > { %p533_p11 = pnand %p538_p10, %p755_p8 }
  0x45   : > { %p534_p12 = pneg %p533_p11 }
  0x47   : > { %660 = dma.done.wait (%p534_p12), %s387_s8, 64  }
  0x48   : > { %662 = vsyncadd (%p534_p12), %s387_s8, 4294967232  ;;  %s17_s17 = sadd.s32 1, %s685_s17   ;;  %s817_s12 = smov %s669_s13 }
  0x49   : > { %p14_p13 = scmp.ge.s32.totalorder %s17_s17, 4   ;;  %s818_s13 = smov %s673_s14 }
  0x4a   : > { %s819_s14 = smov %s761_s25  ;;  %s820_s15 = smov %s681_s16 }
  0x4b   : > { %s821_s16 = smov %s823_s20  ;;  %16 = sbr.rel (!%p14_p13) target bundleno = 5 (0x5), region = 75 }
  0x50   :  { %393 = vsyncpa [#allocation3], 1 }
  0x51   :  { %395 = vsyncpa [#allocation3 + $0x1], 1 }
  0x52   :  { %396 = vsyncpa [#allocation4], 1 }
  0x53   :  { %398 = vsyncpa [#allocation4 + $0x1], 1 }

</bundles_post_ra>
